<compile_context>
chip_gen: v6e
topology: v6e:2x2x1
jax: 0.10.0
libtpu: 0.0.40
codegen_flags: <defaults>
</compile_context>

<pallas_src>
import functools

import jax
import jax.numpy as jnp
from jax.experimental import pallas as pl
from jax.experimental.pallas import tpu as pltpu

NEG_INF = -1e30          # finite "minus infinity" for padded logit columns
LANE = 128               # TPU lane width
DEFAULT_TILE_B = 512     # batch tile for f32/bf16; fits well inside 32 MiB scoped VMEM


def _round_up(x: int, m: int) -> int:
    return ((x + m - 1) // m) * m


# ---------------------------------------------------------------------------
# In-kernel MLP trunk: logits = tanh(tanh(x@W1+b1)@W2+b2)@W3 + b3
# Weights are bf16 (MXU-native on v6e/v7x), accumulation f32, bias/tanh f32.
# ---------------------------------------------------------------------------
def _mlp_logits(obs_ref, w1_ref, b1_ref, w2_ref, b2_ref, w3_ref, b3_ref):
    x = obs_ref[...].astype(jnp.bfloat16)
    h1 = jnp.tanh(
        jnp.dot(x, w1_ref[...], preferred_element_type=jnp.float32) + b1_ref[...])
    h2 = jnp.tanh(
        jnp.dot(h1.astype(jnp.bfloat16), w2_ref[...],
                preferred_element_type=jnp.float32) + b2_ref[...])
    logits = (
        jnp.dot(h2.astype(jnp.bfloat16), w3_ref[...],
                preferred_element_type=jnp.float32) + b3_ref[...])
    return logits


def _policy_kernel(obs_ref, w1_ref, b1_ref, w2_ref, b2_ref, w3_ref, b3_ref,
                   logits_ref, logp_ref):
    """Rollout path: logits + log-softmax (no entropy)."""
    logits = _mlp_logits(obs_ref, w1_ref, b1_ref, w2_ref, b2_ref, w3_ref, b3_ref)
    m = jnp.max(logits, axis=-1, keepdims=True)
    z = logits - m
    s = jnp.sum(jnp.exp(z), axis=-1, keepdims=True)
    logits_ref[...] = logits
    logp_ref[...] = z - jnp.log(s)


def _eval_kernel(obs_ref, w1_ref, b1_ref, w2_ref, b2_ref, w3_ref, b3_ref,
                 out_ref, *, action_dim: int):
    """Training path: log-softmax + entropy, packed into ONE lane-dense output.

    Column `action_dim` (a padded, otherwise-dead column) carries the per-row
    entropy; columns [0, action_dim) carry the log-probs.
    """
    logits = _mlp_logits(obs_ref, w1_ref, b1_ref, w2_ref, b2_ref, w3_ref, b3_ref)
    m = jnp.max(logits, axis=-1, keepdims=True)
    z = logits - m
    e = jnp.exp(z)                                    # reused below (no 2nd exp)
    s = jnp.sum(e, axis=-1, keepdims=True)
    inv = pl.reciprocal(s, approx=True)               # EUP slot, ~free
    lse = jnp.log(s)
    logp = z - lse
    # H = -sum(p * logp) = lse - sum(e * z) / s
    ent = lse - jnp.sum(e * z, axis=-1, keepdims=True) * inv
    col = jax.lax.broadcasted_iota(jnp.int32, logp.shape, 1)
    out_ref[...] = jnp.where(col == action_dim, ent, logp)


# ---------------------------------------------------------------------------
# pallas_call wrapper: batch grid, resident weights, lane-dense outputs
# ---------------------------------------------------------------------------
def _actor_pallas(obs, w1, b1, w2, b2, w3, b3, *, action_dim, with_entropy):
    B, obs_dim = obs.shape
    H = w1.shape[1]
    A_pad = w3.shape[1]
    A = action_dim

    tile_b = min(DEFAULT_TILE_B, _round_up(B, 8))
    B_pad = _round_up(B, tile_b)
    if B_pad != B:
        obs = jnp.pad(obs, ((0, B_pad - B), (0, 0)))
    grid = (B_pad // tile_b,)

    obs_spec = pl.BlockSpec((tile_b, obs_dim), lambda i: (i, 0))
    # Weights: same block index on every grid step -> stay resident in VMEM.
    wspec = lambda a: pl.BlockSpec(a.shape, lambda i: (0, 0))
    in_specs = [obs_spec, wspec(w1), wspec(b1), wspec(w2), wspec(b2),
                wspec(w3), wspec(b3)]
    out_block = pl.BlockSpec((tile_b, A_pad), lambda i: (i, 0))

    flops = 2 * B_pad * (obs_dim * H + H * H + H * A_pad)
    transcendentals = B_pad * (2 * H + A_pad + 2)      # tanh x2 + exp + log/recip
    weight_bytes = sum(int(a.size) * a.dtype.itemsize
                       for a in (w1, b1, w2, b2, w3, b3))

    compiler_params = pltpu.CompilerParams(
        dimension_semantics=("parallel",),             # megacore sharding on v7x
        vmem_limit_bytes=32 * 1024 * 1024,             # explicit; fits v7x 64 MiB VMEM
    )

    if with_entropy:
        kernel = functools.partial(_eval_kernel, action_dim=A)
        out_shape = jax.ShapeDtypeStruct((B_pad, A_pad), jnp.float32)
        out_specs = out_block
        out_bytes = B_pad * A_pad * 4
    else:
        kernel = _policy_kernel
        out_shape = (jax.ShapeDtypeStruct((B_pad, A_pad), jnp.float32),
                     jax.ShapeDtypeStruct((B_pad, A_pad), jnp.float32))
        out_specs = (out_block, out_block)
        out_bytes = 2 * B_pad * A_pad * 4

    cost = pl.CostEstimate(
        flops=flops,
        transcendentals=transcendentals,
        bytes_accessed=B_pad * obs_dim * 4 + weight_bytes + out_bytes)

    result = pl.pallas_call(
        kernel,
        grid=grid,
        in_specs=in_specs,
        out_specs=out_specs,
        out_shape=out_shape,
        compiler_params=compiler_params,
        cost_estimate=cost,
    )(obs, w1, b1, w2, b2, w3, b3)

    if with_entropy:
        return result[:B, :A], result[:B, A]           # (logp, entropy)
    logits_pad, logp_pad = result
    return logits_pad[:B, :A], logp_pad[:B, :A]        # (logits, logp)


_actor_pallas_jit = jax.jit(
    _actor_pallas, static_argnames=("action_dim", "with_entropy"))


# ---------------------------------------------------------------------------
# Actor wrapper (mirrors the PyTorch abstract interface, concretized as an MLP)
# ---------------------------------------------------------------------------
class Actor:
    def __init__(self, obs_dim: int, hidden_dim: int, action_dim: int, seed: int = 0):
        self.action_dim = int(action_dim)
        # Pad hidden to the lane width; pad the action dim to the lane width
        # reserving at least one spare column for the packed entropy output.
        h_pad = _round_up(max(hidden_dim, 1), LANE)
        a_pad = _round_up(self.action_dim + 1, LANE)

        key = jax.random.PRNGKey(seed)
        k1, k2, k3 = jax.random.split(key, 3)

        def init_linear(k, fan_in, fan_out, fan_in_pad, fan_out_pad, pad_bias):
            bound = 1.0 / jnp.sqrt(fan_in)
            w = jax.random.uniform(k, (fan_in, fan_out), jnp.float32, -bound, bound)
            w = jnp.zeros((fan_in_pad, fan_out_pad), jnp.float32
                          ).at[:fan_in, :fan_out].set(w)
            b = jnp.full((1, fan_out_pad), pad_bias, jnp.float32
                         ).at[:, :fan_out].set(0.0)
            return w.astype(jnp.bfloat16), b            # bf16 weights, f32 bias

        self.w1, self.b1 = init_linear(k1, obs_dim, hidden_dim, obs_dim, h_pad, 0.0)
        self.w2, self.b2 = init_linear(k2, hidden_dim, hidden_dim, h_pad, h_pad, 0.0)
        # Padded action columns get bias -1e30 so exp() underflows to 0 exactly
        # (finite value -> no 0*inf NaNs in the entropy reduction).
        self.w3, self.b3 = init_linear(k3, hidden_dim, action_dim, h_pad, a_pad, NEG_INF)

    # -- internal -----------------------------------------------------------
    def _policy(self, obs):
        return _actor_pallas_jit(
            obs, self.w1, self.b1, self.w2, self.b2, self.w3, self.b3,
            action_dim=self.action_dim, with_entropy=False)

    # -- public API (mirrors the abstract PyTorch Actor) ---------------------
    def forward(self, obs):
        """Returns logits parameterizing the Categorical action distribution."""
        logits, _ = self._policy(obs)
        return logits

    def select_action(self, obs, key):
        """Samples an action (Gumbel-max trick) and returns (action, log_prob)."""
        logits, logp = self._policy(obs)
        gumbel = -jnp.log(-jnp.log(
            jax.random.uniform(key, logits.shape, minval=1e-6, maxval=1.0 - 1e-6)))
        action = jnp.argmax(logits + gumbel, axis=-1)
        log_prob = jnp.take_along_axis(logp, action[:, None], axis=-1)[:, 0]
        return action, log_prob

    def evaluate_actions(self, obs, action):
        """Returns (log_probs of the given actions, entropy of the distribution)."""
        logp, entropy = _actor_pallas_jit(
            obs, self.w1, self.b1, self.w2, self.b2, self.w3, self.b3,
            action_dim=self.action_dim, with_entropy=True)
        log_probs = jnp.take_along_axis(logp, action[:, None], axis=-1)[:, 0]
        return log_probs, entropy


# ---------------------------------------------------------------------------
if __name__ == "__main__":
    B, OBS_DIM, HIDDEN, ACTIONS = 2, 16, 32, 8

    key = jax.random.PRNGKey(0)
    k_obs, k_sample = jax.random.split(key)
    obs = jax.random.normal(k_obs, (B, OBS_DIM), jnp.float32)

    actor = Actor(OBS_DIM, HIDDEN, ACTIONS, seed=0)

    logits = actor.forward(obs)
    action, log_prob = actor.select_action(obs, k_sample)
    log_probs, entropy = actor.evaluate_actions(obs, action)

    jax.block_until_ready((logits, action, log_prob, log_probs, entropy))

    # ---- pure-JAX reference of the same (bf16-matmul / f32-accum) math -----
    def ref_forward(x):
        h1 = jnp.tanh(jnp.dot(x.astype(jnp.bfloat16), actor.w1,
                              preferred_element_type=jnp.float32) + actor.b1)
        h2 = jnp.tanh(jnp.dot(h1.astype(jnp.bfloat16), actor.w2,
                              preferred_element_type=jnp.float32) + actor.b2)
        lg = jnp.dot(h2.astype(jnp.bfloat16), actor.w3,
                     preferred_element_type=jnp.float32) + actor.b3
        return lg[:, :ACTIONS]

    ref_logits = ref_forward(obs)
    ref_logp = jax.nn.log_softmax(ref_logits, axis=-1)
    ref_ent = -jnp.sum(jnp.exp(ref_logp) * ref_logp, axis=-1)
    ref_lp_act = jnp.take_along_axis(ref_logp, action[:, None], axis=-1)[:, 0]

    # sanity checks
    assert logits.shape == (B, ACTIONS)
    assert action.shape == (B,)
    assert log_prob.shape == (B,)
    assert log_probs.shape == (B,)
    assert entropy.shape == (B,)
    assert bool(jnp.all(jnp.isfinite(logits)))
    assert bool(jnp.all(jnp.isfinite(entropy)))
    assert bool(jnp.allclose(logits, ref_logits, atol=1e-2, rtol=1e-2))
    assert bool(jnp.allclose(log_probs, ref_lp_act, atol=1e-2, rtol=1e-2))
    assert bool(jnp.allclose(entropy, ref_ent, atol=1e-2, rtol=1e-2))
    assert bool(jnp.allclose(log_prob, log_probs, atol=1e-3, rtol=1e-3))

    print("KERNEL_OK")
</pallas_src>

<mosaic_0001>
module attributes {stable_mosaic.version = 11 : i64} {
  func.func @_policy_kernel(%arg0: i32, %arg1: memref<8x16xf32, #tpu.memory_space<vmem>>, %arg2: memref<16x128xbf16, #tpu.memory_space<vmem>>, %arg3: memref<1x128xf32, #tpu.memory_space<vmem>>, %arg4: memref<128x128xbf16, #tpu.memory_space<vmem>>, %arg5: memref<1x128xf32, #tpu.memory_space<vmem>>, %arg6: memref<128x128xbf16, #tpu.memory_space<vmem>>, %arg7: memref<1x128xf32, #tpu.memory_space<vmem>>, %arg8: memref<8x128xf32, #tpu.memory_space<vmem>>, %arg9: memref<8x128xf32, #tpu.memory_space<vmem>>) attributes {dimension_semantics = [#tpu.dimension_semantics<parallel>], iteration_bounds = array<i64: 1>, scalar_prefetch = 0 : i64, scratch_operands = 0 : i64, tpu.core_type = #tpu.core_type<tc>, window_params = [{transform_indices = @transform_0, window_bounds = array<i64: 8, 16>}, {pipeline_mode = #tpu.pipeline_mode<synchronous>, transform_indices = @transform_1, window_bounds = array<i64: 16, 128>}, {pipeline_mode = #tpu.pipeline_mode<synchronous>, transform_indices = @transform_2, window_bounds = array<i64: 1, 128>}, {pipeline_mode = #tpu.pipeline_mode<synchronous>, transform_indices = @transform_3, window_bounds = array<i64: 128, 128>}, {pipeline_mode = #tpu.pipeline_mode<synchronous>, transform_indices = @transform_4, window_bounds = array<i64: 1, 128>}, {pipeline_mode = #tpu.pipeline_mode<synchronous>, transform_indices = @transform_5, window_bounds = array<i64: 128, 128>}, {pipeline_mode = #tpu.pipeline_mode<synchronous>, transform_indices = @transform_6, window_bounds = array<i64: 1, 128>}, {transform_indices = @transform_7, window_bounds = array<i64: 8, 128>}, {transform_indices = @transform_8, window_bounds = array<i64: 8, 128>}]} {
    %c0 = arith.constant 0 : index
    %c0_0 = arith.constant 0 : index
    %0 = vector.load %arg1[%c0, %c0_0] : memref<8x16xf32, #tpu.memory_space<vmem>>, vector<8x16xf32>
    %1 = arith.truncf %0 : vector<8x16xf32> to vector<8x16xbf16>
    %c0_1 = arith.constant 0 : index
    %c0_2 = arith.constant 0 : index
    %2 = vector.load %arg2[%c0_1, %c0_2] : memref<16x128xbf16, #tpu.memory_space<vmem>>, vector<16x128xbf16>
    %cst = arith.constant dense<0.000000e+00> : vector<8x128xf32>
    %3 = tpu.matmul %1, %2, %cst {dimension_numbers = #tpu.dot_dimension_numbers<[1], [0], [0], [1], [0, 0, 1, 1], [], []>} : vector<8x16xbf16>, vector<16x128xbf16>, vector<8x128xf32> -> vector<8x128xf32>
    %c0_3 = arith.constant 0 : index
    %c0_4 = arith.constant 0 : index
    %4 = vector.load %arg3[%c0_3, %c0_4] : memref<1x128xf32, #tpu.memory_space<vmem>>, vector<1x128xf32>
    %5 = vector.broadcast %4 : vector<1x128xf32> to vector<8x128xf32>
    %6 = arith.addf %3, %5 : vector<8x128xf32>
    %7 = math.tanh %6 : vector<8x128xf32>
    %8 = arith.truncf %7 : vector<8x128xf32> to vector<8x128xbf16>
    %c0_5 = arith.constant 0 : index
    %c0_6 = arith.constant 0 : index
    %9 = vector.load %arg4[%c0_5, %c0_6] : memref<128x128xbf16, #tpu.memory_space<vmem>>, vector<128x128xbf16>
    %cst_7 = arith.constant dense<0.000000e+00> : vector<8x128xf32>
    %10 = tpu.matmul %8, %9, %cst_7 {dimension_numbers = #tpu.dot_dimension_numbers<[1], [0], [0], [1], [0, 0, 1, 1], [], []>} : vector<8x128xbf16>, vector<128x128xbf16>, vector<8x128xf32> -> vector<8x128xf32>
    %c0_8 = arith.constant 0 : index
    %c0_9 = arith.constant 0 : index
    %11 = vector.load %arg5[%c0_8, %c0_9] : memref<1x128xf32, #tpu.memory_space<vmem>>, vector<1x128xf32>
    %12 = vector.broadcast %11 : vector<1x128xf32> to vector<8x128xf32>
    %13 = arith.addf %10, %12 : vector<8x128xf32>
    %14 = math.tanh %13 : vector<8x128xf32>
    %15 = arith.truncf %14 : vector<8x128xf32> to vector<8x128xbf16>
    %c0_10 = arith.constant 0 : index
    %c0_11 = arith.constant 0 : index
    %16 = vector.load %arg6[%c0_10, %c0_11] : memref<128x128xbf16, #tpu.memory_space<vmem>>, vector<128x128xbf16>
    %cst_12 = arith.constant dense<0.000000e+00> : vector<8x128xf32>
    %17 = tpu.matmul %15, %16, %cst_12 {dimension_numbers = #tpu.dot_dimension_numbers<[1], [0], [0], [1], [0, 0, 1, 1], [], []>} : vector<8x128xbf16>, vector<128x128xbf16>, vector<8x128xf32> -> vector<8x128xf32>
    %c0_13 = arith.constant 0 : index
    %c0_14 = arith.constant 0 : index
    %18 = vector.load %arg7[%c0_13, %c0_14] : memref<1x128xf32, #tpu.memory_space<vmem>>, vector<1x128xf32>
    %19 = vector.broadcast %18 : vector<1x128xf32> to vector<8x128xf32>
    %20 = arith.addf %17, %19 : vector<8x128xf32>
    %cst_15 = arith.constant dense<0xFF800000> : vector<8xf32>
    %21 = vector.multi_reduction <maximumf>, %20, %cst_15 [1] : vector<8x128xf32> to vector<8xf32>
    %22 = vector.shape_cast %21 : vector<8xf32> to vector<8x1xf32>
    %23 = vector.broadcast %22 : vector<8x1xf32> to vector<8x128xf32>
    %24 = arith.subf %20, %23 : vector<8x128xf32>
    %25 = math.exp %24 : vector<8x128xf32>
    %cst_16 = arith.constant dense<0.000000e+00> : vector<8xf32>
    %26 = vector.multi_reduction <add>, %25, %cst_16 [1] : vector<8x128xf32> to vector<8xf32>
    %27 = vector.shape_cast %26 : vector<8xf32> to vector<8x1xf32>
    %c0_17 = arith.constant 0 : index
    %c0_18 = arith.constant 0 : index
    %28 = vector.load %arg8[%c0_17, %c0_18] : memref<8x128xf32, #tpu.memory_space<vmem>>, vector<8x128xf32>
    tpu.vector_store %arg8[%c0_17, %c0_18], %20 {strides = array<i32>} : memref<8x128xf32, #tpu.memory_space<vmem>>, vector<8x128xf32>,
    %29 = math.log %27 : vector<8x1xf32>
    %30 = vector.broadcast %29 : vector<8x1xf32> to vector<8x128xf32>
    %31 = arith.subf %24, %30 : vector<8x128xf32>
    %c0_19 = arith.constant 0 : index
    %c0_20 = arith.constant 0 : index
    %32 = vector.load %arg9[%c0_19, %c0_20] : memref<8x128xf32, #tpu.memory_space<vmem>>, vector<8x128xf32>
    tpu.vector_store %arg9[%c0_19, %c0_20], %31 {strides = array<i32>} : memref<8x128xf32, #tpu.memory_space<vmem>>, vector<8x128xf32>,
    return
  }
  func.func @transform_0(%arg0: i32) -> (i32, i32) {
    %c0_i32 = arith.constant 0 : i32
    %c0_i32_0 = arith.constant 0 : i32
    return %arg0, %c0_i32 : i32, i32
  }
  func.func @transform_1(%arg0: i32) -> (i32, i32) {
    %c0_i32 = arith.constant 0 : i32
    %c0_i32_0 = arith.constant 0 : i32
    %c0_i32_1 = arith.constant 0 : i32
    return %c0_i32, %c0_i32_0 : i32, i32
  }
  func.func @transform_2(%arg0: i32) -> (i32, i32) {
    %c0_i32 = arith.constant 0 : i32
    %c0_i32_0 = arith.constant 0 : i32
    %c0_i32_1 = arith.constant 0 : i32
    return %c0_i32, %c0_i32_0 : i32, i32
  }
  func.func @transform_3(%arg0: i32) -> (i32, i32) {
    %c0_i32 = arith.constant 0 : i32
    %c0_i32_0 = arith.constant 0 : i32
    %c0_i32_1 = arith.constant 0 : i32
    return %c0_i32, %c0_i32_0 : i32, i32
  }
  func.func @transform_4(%arg0: i32) -> (i32, i32) {
    %c0_i32 = arith.constant 0 : i32
    %c0_i32_0 = arith.constant 0 : i32
    %c0_i32_1 = arith.constant 0 : i32
    return %c0_i32, %c0_i32_0 : i32, i32
  }
  func.func @transform_5(%arg0: i32) -> (i32, i32) {
    %c0_i32 = arith.constant 0 : i32
    %c0_i32_0 = arith.constant 0 : i32
    %c0_i32_1 = arith.constant 0 : i32
    return %c0_i32, %c0_i32_0 : i32, i32
  }
  func.func @transform_6(%arg0: i32) -> (i32, i32) {
    %c0_i32 = arith.constant 0 : i32
    %c0_i32_0 = arith.constant 0 : i32
    %c0_i32_1 = arith.constant 0 : i32
    return %c0_i32, %c0_i32_0 : i32, i32
  }
  func.func @transform_7(%arg0: i32) -> (i32, i32) {
    %c0_i32 = arith.constant 0 : i32
    %c0_i32_0 = arith.constant 0 : i32
    return %arg0, %c0_i32 : i32, i32
  }
  func.func @transform_8(%arg0: i32) -> (i32, i32) {
    %c0_i32 = arith.constant 0 : i32
    %c0_i32_0 = arith.constant 0 : i32
    return %arg0, %c0_i32 : i32, i32
  }
}

</mosaic_0001>

<bundles_post_ra>
// kernel: _actor_pallas.1
= control target key start
LH: loop header
LB: loop body
LE: loop exit
PB: predicated region body
PF: predicated region fallthrough
CT: control target
= control target key end

     0   :  { %14 = vsyncpa [#allocation3], 0  ;;  %s629_s0 = inlined_call_operand.vmem [shape: f32[8,16], index: 0, kind: input, shape index: {}]   ;;  %s630_s1 = inlined_call_operand.vmem [shape: bf16[16,128], index: 1, kind: input, shape index: {}]   ;;  %s631_s2 = inlined_call_operand.vmem [shape: f32[1,128], index: 2, kind: input, shape index: {}]   ;;  %s632_s3 = inlined_call_operand.hbm [shape: bf16[128,128], index: 3, kind: input, shape index: {}]   ;;  %s633_s4 = inlined_call_operand.vmem [shape: f32[1,128], index: 4, kind: input, shape index: {}]   ;;  %s634_s5 = inlined_call_operand.hbm [shape: bf16[128,128], index: 5, kind: input, shape index: {}]   ;;  %s635_s6 = inlined_call_operand.vmem [shape: f32[1,128], index: 6, kind: input, shape index: {}]   ;;  %s636_s7 = inlined_call_operand.vmem [shape: f32[8,128], index: 7, kind: output, shape index: {0}]   ;;  %s637_s8 = inlined_call_operand.vmem [shape: f32[8,128], index: 8, kind: output, shape index: {1}]  }
   0x1   :  { %15 = vsyncpa [#allocation5], 0  ;;  %s528_s27 = smov [#allocation2]  }
   0x2   :  { %s27_s28 = sshll.u32 %s528_s27, 4  ;;  %s28_s28 = int_to_ptr.vmem [resolvable:$true] %s27_s28 }
   0x3   :  { %s492_s29 = scalar_lea.vmem %s28_s28, 1024  ;;  %p497_p1 = scmp.lt.s32.totalorder %s28_s28, %s28_s28 }
   0x4   :  { %p493_p0 = scmp.ne.s32.totalorder %s28_s28, %s492_s29  ;;  %p498_p2 = scmp.lt.s32.totalorder %s492_s29, %s492_s29 }
   0x6   :  { %p499_p3 = por %p498_p2, %p497_p1 }
   0x8   :  { %p500_p4 = pnand %p499_p3, %p493_p0 }
   0xa   :  { %503 = shalt.err (!%p500_p4)
}
   0xb   :  { %s529_s30 = smov 64   ;;  %s530_s9 = smov 4  }
   0xc   :  { %33 = dma.hbm_to_vmem [thread:$0]  %s632_s3, 1024, %s28_s28, [#allocation3], %s529_s30, %s529_s30, %s530_s9  }
   0xd   :  { %s531_s12 = smov [#allocation4]  }
   0xe   :  { %s41_s13 = sshll.u32 %s531_s12, 4  ;;  %s42_s13 = int_to_ptr.vmem [resolvable:$true] %s41_s13 }
   0xf   :  { %s512_s14 = scalar_lea.vmem %s42_s13, 1024  ;;  %p517_p6 = scmp.lt.s32.totalorder %s42_s13, %s42_s13 }
  0x10   :  { %p513_p5 = scmp.ne.s32.totalorder %s42_s13, %s512_s14  ;;  %p518_p7 = scmp.lt.s32.totalorder %s512_s14, %s512_s14 }
  0x12   :  { %p519_p8 = por %p518_p7, %p517_p6 }
  0x14   :  { %p520_p9 = pnand %p519_p8, %p513_p5 }
  0x16   :  { %523 = shalt.err (!%p520_p9)
}
  0x17   :  { %47 = dma.hbm_to_vmem [thread:$0]  %s634_s5, 1024, %s42_s13, [#allocation5], %s529_s30, %s529_s30, %s530_s9  }
  0x18   :  { %524 = dma.done.wait [#allocation3], 1024  }
  0x19   :  { %525 = vsyncadd [#allocation3], 4294966272 }
  0x1a   :  { %526 = dma.done.wait [#allocation5], 1024  }
  0x1b   :  { %527 = vsyncadd [#allocation5], 4294966272  ;;  %v532_v0 = vmov 0.0   ;;  %vm533_vm0 = vmmov 0   ;;  %v459_v1 = vld [vmem:[%s630_s1] sm:$0xff]   ;;  %vm74_vm1 = vcmask 130048  }
  0x1c   :  { %407 = vmatprep.subr.bf16.mxu0 %v532_v0  ;;  %409 = vmatprep.mubr.msk.bf16.mxu0 %vm533_vm0, %v532_v0  ;;  %v57_v2 = vld [vmem:[%s629_s0] sm:$0xff]  ;;  %v460_v4 = vld [vmem:[#allocation2 + $0x38] sm:$0xff]   ;;  %v461_v5 = vld [vmem:[#allocation2 + $0x30] sm:$0xff]  }
  0x1d   :  { %413 = vmatprep.subr.bf16.mxu1 %v532_v0  ;;  %429 = vmatprep.mubr.msk.bf16.mxu1 %vm533_vm0, %v532_v0  ;;  %v58_v3 = vpack.c.bf16 %v57_v2, %v57_v2  ;;  %v462_v6 = vld [vmem:[#allocation2 + $0x28] sm:$0xff]   ;;  %v463_v7 = vld [vmem:[#allocation2 + $0x20] sm:$0xff]   ;;  %v464_v8 = vld [vmem:[#allocation2 + $0x18] sm:$0xff]  }
  0x1e   :  { %408 = vmatpush3.bf16.msra.mxu0 %v459_v1  ;;  %414 = vmatpush3.bf16.msra.mxu1 %v460_v4  ;;  %v465_v9 = vld [vmem:[#allocation2 + $0x10] sm:$0xff]   ;;  %v466_v10 = vld [vmem:[#allocation2 + $0x8] sm:$0xff]   ;;  %v467_v11 = vld [vmem:[#allocation2] sm:$0xff]  }
  0x1f   :  { %433 = vmatprep.subr.bf16.mxu0 %v532_v0  ;;  %415 = vmatprep.subr.bf16.mxu1 %v532_v0  ;;  %v468_v12 = vld [vmem:[#allocation4 + $0x38] sm:$0xff]   ;;  %v469_v13 = vld [vmem:[#allocation4 + $0x30] sm:$0xff]   ;;  %v470_v14 = vld [vmem:[#allocation4 + $0x28] sm:$0xff]  }
  0x20   :  { %v366_v15 = vld [vmem:[%s631_s2] ss:$0 sm:$0xff]  ;;  %v472_v24 = vld [vmem:[#allocation4 + $0x18] sm:$0xff]   ;;  %v473_v25 = vld [vmem:[#allocation4 + $0x10] sm:$0xff]  }
  0x21   :  { %410 = vmatmul.mubr.msk.bf16.vlgmr.msra.gmra.mxu0 %vm74_vm1, %v58_v3  ;;  %v471_v23 = vld [vmem:[#allocation4 + $0x20] sm:$0xff]   ;;  %v474_v26 = vld [vmem:[#allocation4 + $0x8] sm:$0xff]  }
  0x22   :  { %449 = vmatprep.mubr.msk.bf16.mxu0 %vm533_vm0, %v532_v0  ;;  %416 = vmatpush3.bf16.msra.mxu1 %v461_v5  ;;  %v475_v27 = vld [vmem:[#allocation4] sm:$0xff]  }
  0x23   :  { %417 = vmatprep.subr.bf16.mxu1 %v532_v0  ;;  %434 = vmatpush3.bf16.msra.mxu0 %v468_v12  ;;  %v369_v28 = vld [vmem:[%s633_s4] ss:$0 sm:$0xff] }
  0x24   :  { %435 = vmatprep.subr.bf16.mxu0 %v532_v0  ;;  %v378_v36 = vld [vmem:[%s635_s6] ss:$0 sm:$0xff] }
  0x26   :  { %418 = vmatpush3.bf16.msra.mxu1 %v462_v6 }
  0x27   :  { %419 = vmatprep.subr.bf16.mxu1 %v532_v0  ;;  %436 = vmatpush3.bf16.msra.mxu0 %v469_v13 }
  0x28   :  { %437 = vmatprep.subr.bf16.mxu0 %v532_v0 }
  0x2a   :  { %420 = vmatpush3.bf16.msra.mxu1 %v463_v7 }
  0x2b   :  { %421 = vmatprep.subr.bf16.mxu1 %v532_v0  ;;  %438 = vmatpush3.bf16.msra.mxu0 %v470_v14 }
  0x2c   :  { %439 = vmatprep.subr.bf16.mxu0 %v532_v0 }
  0x2e   :  { %422 = vmatpush3.bf16.msra.mxu1 %v464_v8 }
  0x2f   :  { %423 = vmatprep.subr.bf16.mxu1 %v532_v0  ;;  %440 = vmatpush3.bf16.msra.mxu0 %v471_v23 }
  0x30   :  { %441 = vmatprep.subr.bf16.mxu0 %v532_v0 }
  0x32   :  { %424 = vmatpush3.bf16.msra.mxu1 %v465_v9 }
  0x33   :  { %425 = vmatprep.subr.bf16.mxu1 %v532_v0  ;;  %442 = vmatpush3.bf16.msra.mxu0 %v472_v24 }
  0x34   :  { %443 = vmatprep.subr.bf16.mxu0 %v532_v0 }
  0x36   :  { %426 = vmatpush3.bf16.msra.mxu1 %v466_v10 }
  0x37   :  { %427 = vmatprep.subr.bf16.mxu1 %v532_v0  ;;  %444 = vmatpush3.bf16.msra.mxu0 %v473_v25 }
  0x38   :  { %445 = vmatprep.subr.bf16.mxu0 %v532_v0 }
  0x3a   :  { %428 = vmatpush3.bf16.msra.mxu1 %v467_v11 }
  0x3b   :  { %446 = vmatpush3.bf16.msra.mxu0 %v474_v26 }
  0x3c   :  { %447 = vmatprep.subr.bf16.mxu0 %v532_v0 }
  0x3f   :  { %448 = vmatpush3.bf16.msra.mxu0 %v475_v27 }
  0xe1   :  { %v112_v16 = vpop.f32.mrf.mxu0 }
  0xe2   :  { %v113_v17 = vadd.f32 %v366_v15, %v112_v16 }
  0xe3   :  { %v411_v18 = vpop.f32.mrf.mxu0 }
  0xe4   :  { %476 = vtanh.f32 %v113_v17 }
  0xe5   :  { %v115_v19 = vpop.f32.mrf.mxu0 }
  0xe7   :  { %v412_v20 = vpop.f32.mrf.mxu0 }
  0xf1   :  { %v477_v21 = vpop.eup %476 }
  0xf2   :  { %v119_v22 = vpack.c.bf16 %v477_v21, %v477_v21 }
  0xf4   :  { %430 = vmatmul.mubr.bf16.vlgmr.msra.gmra.mxu1 %v119_v22 }
 0x1b4   :  { %v225_v29 = vpop.f32.mrf.mxu1 }
 0x1b5   :  { %v226_v30 = vadd.f32 %v369_v28, %v225_v29 }
 0x1b6   :  { %v431_v31 = vpop.f32.mrf.mxu1 }
 0x1b7   :  { %478 = vtanh.f32 %v226_v30 }
 0x1b8   :  { %v228_v32 = vpop.f32.mrf.mxu1 }
 0x1ba   :  { %v432_v33 = vpop.f32.mrf.mxu1 }
 0x1c4   :  { %v479_v34 = vpop.eup %478 }
 0x1c5   :  { %v232_v35 = vpack.c.bf16 %v479_v34, %v479_v34 }
 0x1c7   :  { %450 = vmatmul.mubr.bf16.vlgmr.msra.gmra.mxu0 %v232_v35 }
 0x287   :  { %v338_v37 = vpop.f32.mrf.mxu0 }
 0x288   :  { %v339_v38 = vadd.f32 %v378_v36, %v338_v37 }
 0x289   :  { %v451_v39 = vpop.f32.mrf.mxu0 }
 0x28a   :  { %351 = vst [vmem:[%s636_s7] sm:$0xff] %v339_v38  ;;  %344 = vmax.xlane.f32.xlu0 %v339_v38 }
 0x28b   :  { %v341_v40 = vpop.f32.mrf.mxu0 }
 0x28d   :  { %v452_v41 = vpop.f32.mrf.mxu0 }
 0x313   :  { %v345_v42 = vpop.xlane.xlu0 %344 }
 0x314   :  { %v346_v43 = vsub.f32 %v339_v38, %v345_v42 }
 0x316   :  { %v347_v44 = vmul.f32 1.442695, %v346_v43 }
 0x318   :  { %480 = vpow2.f32 %v347_v44 }
 0x325   :  { %v481_v45 = vpop.eup %480 }
 0x326   :  { %349 = vadd.xlane.f32.xlu0 %v481_v45 }
 0x3af   :  { %v350_v46 = vpop.xlane.xlu0 %349 }
 0x3b0   :  { %482 = vlog2.f32 %v350_v46 }
 0x3bd   :  { %v483_v47 = vpop.eup %482 }
 0x3be   :  { %v353_v48 = vmul.f32 0.6931472, %v483_v47 }
 0x3c0   :  { %v354_v49 = vsub.f32 %v346_v43, %v353_v48 }
 0x3c2   :  { %355 = vst [vmem:[%s637_s8] sm:$0xff] %v354_v49 }
 0x3c3   :  { %364 = vsyncpa [#allocation3], 1 }
 0x3c4   :  { %365 = vsyncpa [#allocation5], 1 }

</bundles_post_ra>
